<compile_context>
chip_gen: v7x
topology: tpu7x:2x2x1
jax: 0.10.0
libtpu: 0.0.40
codegen_flags: <defaults>
</compile_context>

<pallas_src>
import jax
import jax.numpy as jnp
from jax import lax
from jax.experimental import pallas as pl
from jax.experimental.pallas import tpu as pltpu


def _weighted_loss_kernel(w_ref, l_ref, o_ref):
    # w_ref: (T,) f32 in SMEM — task_weights
    # l_ref: (T,) f32 in SMEM — task_losses
    # o_ref: (1,) f32 in SMEM — total weighted loss
    T = w_ref.shape[0]        # static Python int at trace time
    half = T // 2

    def body(i, carry):
        # Two independent accumulator chains -> both scalar-ALU slots per bundle.
        acc0, acc1 = carry
        acc0 = acc0 + w_ref[i] * l_ref[i]
        acc1 = acc1 + w_ref[half + i] * l_ref[half + i]
        return acc0, acc1

    acc0, acc1 = lax.fori_loop(
        0, half, body, (jnp.float32(0.0), jnp.float32(0.0)), unroll=True
    )
    total = acc0 + acc1
    if T % 2 == 1:  # static tail element when T is odd
        total = total + w_ref[T - 1] * l_ref[T - 1]
    o_ref[0] = total


def _forward_pallas(task_weights, task_losses):
    T = task_weights.shape[0]
    w = task_weights.astype(jnp.float32)
    l = task_losses.astype(jnp.float32)

    out = pl.pallas_call(
        _weighted_loss_kernel,
        out_shape=jax.ShapeDtypeStruct((1,), jnp.float32),
        in_specs=[
            pl.BlockSpec(memory_space=pltpu.MemorySpace.SMEM),
            pl.BlockSpec(memory_space=pltpu.MemorySpace.SMEM),
        ],
        out_specs=pl.BlockSpec(memory_space=pltpu.MemorySpace.SMEM),
        # Tell the XLA scheduler this custom call is negligible (2*T flops,
        # ~(2T+1) f32 words touched) so it doesn't pessimize surrounding ops.
        cost_estimate=pl.CostEstimate(
            flops=2 * T, bytes_accessed=4 * (2 * T + 1), transcendentals=0
        ),
    )(w, l)
    # reshape(()) on the (1,) output instead of out[0]: no extra XLA slice op.
    return out.reshape(())


@jax.custom_vjp
def _weighted_task_loss(task_weights, task_losses):
    return _forward_pallas(task_weights, task_losses)


def _weighted_task_loss_fwd(task_weights, task_losses):
    total = _forward_pallas(task_weights, task_losses)
    return total, (task_weights, task_losses)


def _weighted_task_loss_bwd(residuals, g):
    task_weights, task_losses = residuals
    # d total / d w_i = loss_i ;  d total / d loss_i = w_i
    return (
        (g * task_losses).astype(task_weights.dtype),
        (g * task_weights).astype(task_losses.dtype),
    )


_weighted_task_loss.defvjp(_weighted_task_loss_fwd, _weighted_task_loss_bwd)


def learnable_task_weighted_loss(task_weights, task_losses):
    """Pallas equivalent of LearnableTaskWeightedLoss.forward.

    task_weights: (T,) f32 learnable parameter (init = ones(T))
    task_losses:  list/tuple of scalar losses, or a (T,) array
    returns:      scalar f32 total loss = sum_i w[i] * loss[i]
    """
    if isinstance(task_losses, (list, tuple)):
        task_losses = jnp.stack(
            [jnp.asarray(x, jnp.float32).reshape(()) for x in task_losses]
        )
    task_losses = jnp.asarray(task_losses)
    T = task_weights.shape[0]
    if task_losses.shape[0] != T:
        raise ValueError(
            f"Number of task losses ({task_losses.shape[0]}) must match "
            f"number of task weights ({T})"
        )
    return _weighted_task_loss(task_weights, task_losses)


if __name__ == "__main__":
    # Module init: reg_list of length 4 -> task_weights = ones(4)
    num_tasks = 4
    task_weights = jnp.ones((num_tasks,), dtype=jnp.float32)

    # Deterministic example per-task (scalar) losses
    key = jax.random.PRNGKey(0)
    task_losses = jax.random.uniform(key, (num_tasks,), dtype=jnp.float32) * 3.0

    total = learnable_task_weighted_loss(task_weights, task_losses)
    total = jax.block_until_ready(total)

    # Forward reference check (same semantics as the PyTorch module)
    ref = jnp.sum(task_weights * task_losses)
    assert jnp.allclose(total, ref, rtol=1e-6, atol=1e-6), (total, ref)

    # Gradient check: learnable weights must receive d total / d w_i = loss_i
    grad_w = jax.grad(learnable_task_weighted_loss, argnums=0)(task_weights, task_losses)
    grad_w = jax.block_until_ready(grad_w)
    assert jnp.allclose(grad_w, task_losses, rtol=1e-6, atol=1e-6), (grad_w, task_losses)

    print("KERNEL_OK")
</pallas_src>

<mosaic_0001>
module attributes {stable_mosaic.version = 11 : i64} {
  func.func @_weighted_loss_kernel(%arg0: memref<4xf32, #tpu.memory_space<smem>>, %arg1: memref<4xf32, #tpu.memory_space<smem>>, %arg2: memref<1xf32, #tpu.memory_space<smem>>) attributes {dimension_semantics = [], scalar_prefetch = 0 : i64, scratch_operands = 0 : i64, tpu.core_type = #tpu.core_type<tc>} {
    %cst = arith.constant 0.000000e+00 : f32
    %cst_0 = arith.constant 0.000000e+00 : f32
    %c0_i32 = arith.constant 0 : i32
    %0 = arith.index_cast %c0_i32 : i32 to index
    %1 = memref.load %arg0[%0] : memref<4xf32, #tpu.memory_space<smem>>
    %2 = arith.index_cast %c0_i32 : i32 to index
    %3 = memref.load %arg1[%2] : memref<4xf32, #tpu.memory_space<smem>>
    %4 = arith.mulf %1, %3 : f32
    %5 = arith.addf %cst, %4 : f32
    %c2_i32 = arith.constant 2 : i32
    %6 = arith.addi %c2_i32, %c0_i32 : i32
    %7 = arith.index_cast %6 : i32 to index
    %8 = memref.load %arg0[%7] : memref<4xf32, #tpu.memory_space<smem>>
    %c2_i32_1 = arith.constant 2 : i32
    %9 = arith.addi %c2_i32_1, %c0_i32 : i32
    %10 = arith.index_cast %9 : i32 to index
    %11 = memref.load %arg1[%10] : memref<4xf32, #tpu.memory_space<smem>>
    %12 = arith.mulf %8, %11 : f32
    %13 = arith.addf %cst_0, %12 : f32
    %c1_i32 = arith.constant 1 : i32
    %14 = arith.index_cast %c1_i32 : i32 to index
    %15 = memref.load %arg0[%14] : memref<4xf32, #tpu.memory_space<smem>>
    %16 = arith.index_cast %c1_i32 : i32 to index
    %17 = memref.load %arg1[%16] : memref<4xf32, #tpu.memory_space<smem>>
    %18 = arith.mulf %15, %17 : f32
    %19 = arith.addf %5, %18 : f32
    %c2_i32_2 = arith.constant 2 : i32
    %20 = arith.addi %c2_i32_2, %c1_i32 : i32
    %21 = arith.index_cast %20 : i32 to index
    %22 = memref.load %arg0[%21] : memref<4xf32, #tpu.memory_space<smem>>
    %c2_i32_3 = arith.constant 2 : i32
    %23 = arith.addi %c2_i32_3, %c1_i32 : i32
    %24 = arith.index_cast %23 : i32 to index
    %25 = memref.load %arg1[%24] : memref<4xf32, #tpu.memory_space<smem>>
    %26 = arith.mulf %22, %25 : f32
    %27 = arith.addf %13, %26 : f32
    %c2_i32_4 = arith.constant 2 : i32
    %28 = arith.addf %19, %27 : f32
    %c0 = arith.constant 0 : index
    %29 = memref.load %arg2[%c0] : memref<1xf32, #tpu.memory_space<smem>>
    memref.store %28, %arg2[%c0] : memref<1xf32, #tpu.memory_space<smem>>
    return
  }
}

</mosaic_0001>

<bundles_post_ra>
// kernel: tpu_custom_call.1
= control target key start
LH: loop header
LB: loop body
LE: loop exit
PB: predicated region body
PF: predicated region fallthrough
CT: control target
= control target key end

     0   :  { %7 = vsyncpa [#allocation3], 0  ;;  %s161_s0 = inlined_call_operand.hbm [shape: f32[4], index: 0, kind: input, shape index: {}]   ;;  %s162_s1 = inlined_call_operand.vmem [shape: f32[4], index: 1, kind: input, shape index: {}]   ;;  %s163_s2 = inlined_call_operand.hbm [shape: f32[1], index: 2, kind: output, shape index: {}]  }
   0x1   :  { %8 = vsyncpa [#allocation5], 0 }
   0x2   :  { %9 = vsyncpa [#allocation4], 0  ;;  %s24_s11 = sshll.u32 %s162_s1, 4  ;;  %s78_s14 = scalar_lea.hbm %s161_s0, 16  ;;  %s25_s11 = int_to_ptr.vmem [resolvable:$true] %s24_s11 }
   0x3   :  { %p79_p0 = scmp.ne.s32.totalorder %s161_s0, %s78_s14  ;;  %p82_p1 = scmp.lt.u32.totalorder %s78_s14, %s161_s0 }
   0x5   :  { %p84_p2 = pnand %p82_p1, %p79_p0 }
   0x7   :  { %87 = shalt.err (!%p84_p2)
}
   0x8   :  { %s116_s19 = smov [#allocation2]   ;;  %s88_s1 = scalar_lea.vmem %s25_s11, 16 }
   0x9   :  { %17 = dma.hbm_to_smem %s161_s0, 16, %s116_s19, [#allocation3]  }
   0xa   :  { %p89_p3 = scmp.ne.s32.totalorder %s25_s11, %s88_s1  ;;  %p93_p4 = scmp.lt.s32.totalorder %s25_s11, %s25_s11 }
   0xb   :  { %p94_p5 = scmp.lt.s32.totalorder %s88_s1, %s88_s1 }
   0xd   :  { %p95_p6 = por %p94_p5, %p93_p4 }
   0xf   :  { %p96_p7 = pnand %p95_p6, %p89_p3 }
  0x11   :  { %99 = shalt.err (!%p96_p7)
}
  0x12   :  { %s117_s22 = smov [#allocation6]  }
  0x13   :  { %27 = dma.vmem_to_smem %s25_s11, 16, %s117_s22, [#allocation5]  }
  0x14   :  { %110 = dma.done.wait [#allocation3], 16  }
  0x15   :  { %111 = vsyncadd [#allocation3], 4294967280 }
  0x16   :  { %112 = dma.done.wait [#allocation5], 16  }
  0x17   :  { %113 = vsyncadd [#allocation5], 4294967280 }
  0x18   :  { %34 = sfence }
  0x19   :  { %s35_s23 = sld [smem:[#allocation2]]  ;;  %s69_s25 = sld [smem:[#allocation2 + $0x2]] }
  0x1a   :  { %s36_s24 = sld [smem:[#allocation6]]  ;;  %s70_s26 = sld [smem:[#allocation6 + $0x2]] }
  0x1b   :  { %s71_s0 = sld [smem:[#allocation2 + $0x1]]  ;;  %s73_s28 = sld [smem:[#allocation2 + $0x3]] }
  0x1c   :  { %s72_s27 = sld [smem:[#allocation6 + $0x1]]  ;;  %s74_s29 = sld [smem:[#allocation6 + $0x3]] }
  0x1d   :  { %s100_s11 = scalar_lea.hbm %s163_s2, 16 }
  0x1e   :  { %p101_p8 = scmp.ne.s32.totalorder %s163_s2, %s100_s11  ;;  %p104_p9 = scmp.lt.u32.totalorder %s100_s11, %s163_s2 }
  0x20   :  { %s37_s30 = smul.f32 %s36_s24, %s35_s23  ;;  %p106_p10 = pnand %p104_p9, %p101_p8 }
  0x21   :  { %s41_s3 = smul.f32 %s70_s26, %s69_s25 }
  0x22   :  { %s45_s4 = smul.f32 %s72_s27, %s71_s0 }
  0x23   :  { %s49_s5 = smul.f32 %s74_s29, %s73_s28 }
  0x24   :  { %s46_s6 = sadd.f32 %s45_s4, %s37_s30 }
  0x25   :  { %s50_s7 = sadd.f32 %s49_s5, %s41_s3 }
  0x27   :  { %s51_s8 = sadd.f32 %s50_s7, %s46_s6 }
  0x29   :  { %53 = sst [smem:[#allocation7]] %s51_s8 }
  0x2a   :  { %109 = shalt.err (!%p106_p10)
}
  0x2b   :  { %s118_s16 = smov [#allocation7]  }
  0x2c   :  { %61 = dma.smem_to_hbm %s118_s16, 16, %s163_s2, [#allocation4]  }
  0x2d   :  { %114 = dma.done.wait [#allocation4], 16  }
  0x2e   :  { %115 = vsyncadd [#allocation4], 4294967280 }
  0x2f   :  { %65 = sfence }
  0x30   :  { %66 = vsyncpa [#allocation3], 1 }
  0x31   :  { %67 = vsyncpa [#allocation4], 1 }
  0x32   :  { %68 = vsyncpa [#allocation5], 1 }

</bundles_post_ra>
